<compile_context>
chip_gen: v7x
topology: tpu7x:2x2x1
jax: 0.10.0
libtpu: 0.0.40
codegen_flags: <defaults>
</compile_context>

<pallas_src>
import functools

import jax
import jax.numpy as jnp
from jax import lax
from jax.experimental import pallas as pl
from jax.experimental.pallas import tpu as pltpu

LANES = 128            # vreg lane width
SUBLANES = 8           # vreg sublane count
CHUNK_ROWS = 512       # strip-mine chunk inside a tile (multiple of 8)
MAX_TILE_ROWS = 8192   # rows per grid step: 8192*128*4B = 4 MiB per f32 input buffer
VMEM_LIMIT = 48 * 1024 * 1024


def _round_up(x, m):
    return -(-x // m) * m


def _round_down(x, m):
    return (x // m) * m


def _combined_loss_kernel(x_ref, t_ref, o_ref, *,
                          n_chunks, chunk_rows, tile_rows, valid_rows):
    i = pl.program_id(0)

    @pl.when(i == 0)
    def _init():
        o_ref[...] = jnp.zeros_like(o_ref)

    def _fold(v):  # (chunk_rows, 128) -> (8, 128), VPU-only adds (no XLU in hot loop)
        return jnp.sum(v.reshape(-1, SUBLANES, LANES), axis=0)

    neg = jnp.float32(jnp.finfo(jnp.float32).min)

    def _chunk(c, carry):
        bce_s, pt_s, p_s, t_s = carry
        r0 = pl.multiple_of(c * chunk_rows, chunk_rows)
        x = x_ref[pl.ds(r0, chunk_rows), :].astype(jnp.float32)
        t = t_ref[pl.ds(r0, chunk_rows), :].astype(jnp.float32)
        if valid_rows is not None:
            # Last grid block may be partial; rows >= valid_rows hold unspecified data.
            row = (i * tile_rows + r0
                   + lax.broadcasted_iota(jnp.int32, (chunk_rows, 1), 0))
            live = row < valid_rows
            x = jnp.where(live, x, neg)   # -> bce = 0, sigmoid = 0
            t = jnp.where(live, t, 0.0)
        # One transcendental per element, shared between BCE and sigmoid.
        e = jnp.exp(-jnp.abs(x))
        bce = jnp.maximum(x, 0.0) - x * t + jnp.log1p(e)   # stable BCE-with-logits
        d = 1.0 / (1.0 + e)
        probs = jnp.where(x >= 0.0, d, 1.0 - d)            # sigmoid(x)
        return (bce_s + _fold(bce), pt_s + _fold(probs * t),
                p_s + _fold(probs), t_s + _fold(t))

    zero = jnp.zeros((SUBLANES, LANES), jnp.float32)
    bce_p, pt_p, p_p, t_p = lax.fori_loop(
        0, n_chunks, _chunk, (zero, zero, zero, zero), unroll=True)

    # Output block is resident across the whole reduction grid (constant index map).
    o_ref[0] += bce_p
    o_ref[1] += pt_p
    o_ref[2] += p_p
    o_ref[3] += t_p


@functools.partial(jax.jit, static_argnames=("bce_weight", "dice_weight", "smooth"))
def combined_loss(logits, targets, bce_weight=0.5, dice_weight=0.5, smooth=1e-6):
    assert logits.shape == targets.shape
    n_elem = logits.size

    # ---- lane-dense slab layout (copy-free reshape in the common case) ----
    if n_elem % LANES == 0 and n_elem >= SUBLANES * LANES:
        rows, pad_elems = n_elem // LANES, 0
    else:
        # Ragged corner case: pad to the next 8x128 boundary only.
        # TODO(synk): this still materializes one padded copy of both streams; a 1-D
        # BlockSpec + element-level mask could remove it but is not worth the risk here.
        padded = _round_up(max(n_elem, SUBLANES * LANES), SUBLANES * LANES)
        rows, pad_elems = padded // LANES, padded - n_elem

    # ---- tiling (all static Python ints) ----
    if rows >= CHUNK_ROWS:
        tile_rows = min(MAX_TILE_ROWS, _round_down(rows, CHUNK_ROWS))
        chunk_rows = CHUNK_ROWS
    else:
        tile_rows = _round_down(rows, SUBLANES)
        chunk_rows = tile_rows
    n_chunks = tile_rows // chunk_rows
    n_tiles = -(-rows // tile_rows)
    valid_rows = rows if rows % tile_rows else None   # emit mask code only when needed

    # Padding values chosen so padded elements contribute exactly 0 to every sum
    # (bce == 0, sigmoid == 0, t == 0) -> no mask stream needed for in-row padding.
    if jnp.issubdtype(logits.dtype, jnp.floating):
        neg_pad = jnp.finfo(logits.dtype).min
    else:
        neg_pad = -(2 ** 30)  # TODO(synk): integer logits are unusual; cast path still works.

    def _to_slab(a, pad_value):
        flat = a.reshape(-1)                 # keep native dtype; cast happens in-kernel
        if pad_elems:
            flat = jnp.pad(flat, (0, pad_elems), constant_values=pad_value)
        return flat.reshape(rows, LANES)

    x2 = _to_slab(logits, neg_pad)
    t2 = _to_slab(targets, 0)

    kernel = functools.partial(
        _combined_loss_kernel, n_chunks=n_chunks, chunk_rows=chunk_rows,
        tile_rows=tile_rows, valid_rows=valid_rows)

    in_spec = pl.BlockSpec((tile_rows, LANES), lambda i: (i, 0))
    partials = pl.pallas_call(
        kernel,
        out_shape=jax.ShapeDtypeStruct((4, SUBLANES, LANES), jnp.float32),
        grid_spec=pltpu.PrefetchScalarGridSpec(
            num_scalar_prefetch=0,
            grid=(n_tiles,),
            in_specs=[in_spec, in_spec],
            out_specs=pl.BlockSpec((4, SUBLANES, LANES), lambda i: (0, 0, 0)),
        ),
        # TODO(synk): on v7x (2 TCs) a real split needs CORE_PARALLEL / pl.core_map;
        # plain "parallel" does not shard across cores, so keep one reduction axis.
        compiler_params=pltpu.CompilerParams(
            dimension_semantics=("arbitrary",),
            vmem_limit_bytes=VMEM_LIMIT),
    )(x2, t2)

    # Tiny epilogue reduction + scalar combination in plain JAX.
    sums = jnp.sum(partials, axis=(1, 2))
    s_bce, s_pt, s_p, s_t = sums[0], sums[1], sums[2], sums[3]

    bce = s_bce / n_elem                                       # BCEWithLogitsLoss (mean)
    dice_coeff = (2.0 * s_pt + smooth) / (s_p + s_t + smooth)
    dice = 1.0 - dice_coeff                                    # DiceLoss on sigmoid(logits)
    return bce_weight * bce + dice_weight * dice


def _reference_loss(logits, targets, bce_weight=0.5, dice_weight=0.5, smooth=1e-6):
    x = logits.astype(jnp.float32)
    t = targets.astype(jnp.float32)
    bce = jnp.mean(jnp.maximum(x, 0.0) - x * t + jnp.log1p(jnp.exp(-jnp.abs(x))))
    p = jax.nn.sigmoid(x)
    inter = jnp.sum(p * t)
    dice = 1.0 - (2.0 * inter + smooth) / (jnp.sum(p) + jnp.sum(t) + smooth)
    return bce_weight * bce + dice_weight * dice


if __name__ == "__main__":
    key = jax.random.PRNGKey(0)
    ks = jax.random.split(key, 8)

    def check(logits, targets, name):
        loss = combined_loss(logits, targets)
        jax.block_until_ready(loss)
        ref = _reference_loss(logits, targets)
        assert jnp.allclose(loss, ref, rtol=1e-4, atol=1e-6), (name, loss, ref)

    # 1) Segmentation-style NCHW shape, element count divisible by 128 (zero-copy path).
    lg = jax.random.normal(ks[0], (2, 4, 16, 16), dtype=jnp.float32)
    tg = (jax.random.uniform(ks[1], (2, 4, 16, 16)) > 0.5).astype(jnp.float32)
    check(lg, tg, "base")

    # 2) Ragged shape (n % 128 != 0) with bf16 targets (narrow-stream contract).
    lg = jax.random.normal(ks[2], (2, 3, 17, 19), dtype=jnp.float32)
    tg = (jax.random.uniform(ks[3], (2, 3, 17, 19)) > 0.5).astype(jnp.bfloat16)
    check(lg, tg, "ragged")

    # 3) Multi-tile grid with a partial last block (in-kernel row-mask path).
    lg = jax.random.normal(ks[4], (2, 4, 96, 100), dtype=jnp.float32)
    tg = (jax.random.uniform(ks[5], (2, 4, 96, 100)) > 0.5).astype(jnp.bfloat16)
    check(lg, tg, "masked-tail")

    # 4) Multiple strip-mine chunks inside a single tile.
    lg = jax.random.normal(ks[6], (1, 4, 128, 256), dtype=jnp.float32)
    tg = (jax.random.uniform(ks[7], (1, 4, 128, 256)) > 0.5).astype(jnp.float32)
    check(lg, tg, "multi-chunk")

    print("KERNEL_OK")
</pallas_src>

<mosaic_0001>
module attributes {stable_mosaic.version = 11 : i64} {
  func.func @_combined_loss_kernel(%arg0: i32, %arg1: memref<16x128xf32, #tpu.memory_space<vmem>>, %arg2: memref<16x128xf32, #tpu.memory_space<vmem>>, %arg3: memref<4x8x128xf32, #tpu.memory_space<vmem>>) attributes {dimension_semantics = [#tpu.dimension_semantics<arbitrary>], iteration_bounds = array<i64: 1>, scalar_prefetch = 0 : i64, scratch_operands = 0 : i64, tpu.core_type = #tpu.core_type<tc>, window_params = [{transform_indices = @transform_0, window_bounds = array<i64: 16, 128>}, {transform_indices = @transform_1, window_bounds = array<i64: 16, 128>}, {pipeline_mode = #tpu.pipeline_mode<synchronous>, transform_indices = @transform_2, window_bounds = array<i64: 4, 8, 128>}]} {
    %c0_i32 = arith.constant 0 : i32
    %0 = arith.cmpi eq, %arg0, %c0_i32 : i32
    %1 = arith.extui %0 : i1 to i32
    %c0_i32_0 = arith.constant 0 : i32
    %2 = arith.cmpi ne, %1, %c0_i32_0 : i32
    scf.if %2 {
      %cst_34 = arith.constant 0.000000e+00 : f32
      %66 = vector.broadcast %cst_34 : f32 to vector<4x8x128xf32>
      %c0_35 = arith.constant 0 : index
      %c0_36 = arith.constant 0 : index
      %c0_37 = arith.constant 0 : index
      %67 = vector.load %arg3[%c0_35, %c0_36, %c0_37] : memref<4x8x128xf32, #tpu.memory_space<vmem>>, vector<4x8x128xf32>
      tpu.vector_store %arg3[%c0_35, %c0_36, %c0_37], %66 {strides = array<i32>} : memref<4x8x128xf32, #tpu.memory_space<vmem>>, vector<4x8x128xf32>,
    } else {
    }
    %cst = arith.constant 0.000000e+00 : f32
    %3 = vector.broadcast %cst : f32 to vector<8x128xf32>
    %c0_i32_1 = arith.constant 0 : i32
    %c16_i32 = arith.constant 16 : i32
    %4 = arith.muli %c0_i32_1, %c16_i32 : i32
    %5 = tpu.assume_multiple %4, 16 : i32
    %6 = arith.index_cast %5 : i32 to index
    %c0 = arith.constant 0 : index
    %7 = vector.load %arg1[%6, %c0] : memref<16x128xf32, #tpu.memory_space<vmem>>, vector<16x128xf32>
    %8 = arith.index_cast %5 : i32 to index
    %c0_2 = arith.constant 0 : index
    %9 = vector.load %arg2[%8, %c0_2] : memref<16x128xf32, #tpu.memory_space<vmem>>, vector<16x128xf32>
    %10 = math.absf %7 : vector<16x128xf32>
    %cst_3 = arith.constant 0.000000e+00 : f32
    %11 = vector.broadcast %cst_3 : f32 to vector<16x128xf32>
    %12 = arith.subf %11, %10 : vector<16x128xf32>
    %13 = math.exp %12 : vector<16x128xf32>
    %cst_4 = arith.constant 0.000000e+00 : f32
    %14 = vector.broadcast %cst_4 : f32 to vector<16x128xf32>
    %15 = arith.maximumf %7, %14 : vector<16x128xf32>
    %16 = arith.mulf %7, %9 : vector<16x128xf32>
    %17 = arith.subf %15, %16 : vector<16x128xf32>
    %18 = math.log1p %13 : vector<16x128xf32>
    %19 = arith.addf %17, %18 : vector<16x128xf32>
    %cst_5 = arith.constant 1.000000e+00 : f32
    %20 = vector.broadcast %cst_5 : f32 to vector<16x128xf32>
    %21 = arith.addf %20, %13 : vector<16x128xf32>
    %cst_6 = arith.constant 1.000000e+00 : f32
    %22 = vector.broadcast %cst_6 : f32 to vector<16x128xf32>
    %23 = arith.divf %22, %21 : vector<16x128xf32>
    %cst_7 = arith.constant 0.000000e+00 : f32
    %24 = vector.broadcast %cst_7 : f32 to vector<16x128xf32>
    %25 = arith.cmpf oge, %7, %24 : vector<16x128xf32>
    %cst_8 = arith.constant 1.000000e+00 : f32
    %26 = vector.broadcast %cst_8 : f32 to vector<16x128xf32>
    %27 = arith.subf %26, %23 : vector<16x128xf32>
    %28 = arith.select %25, %23, %27 : vector<16x128xi1>, vector<16x128xf32>
    %29 = vector.shape_cast %19 : vector<16x128xf32> to vector<2x8x128xf32>
    %cst_9 = arith.constant dense<0.000000e+00> : vector<8x128xf32>
    %30 = vector.multi_reduction <add>, %29, %cst_9 [0] : vector<2x8x128xf32> to vector<8x128xf32>
    %31 = arith.addf %3, %30 : vector<8x128xf32>
    %32 = arith.mulf %28, %9 : vector<16x128xf32>
    %33 = vector.shape_cast %32 : vector<16x128xf32> to vector<2x8x128xf32>
    %cst_10 = arith.constant dense<0.000000e+00> : vector<8x128xf32>
    %34 = vector.multi_reduction <add>, %33, %cst_10 [0] : vector<2x8x128xf32> to vector<8x128xf32>
    %35 = arith.addf %3, %34 : vector<8x128xf32>
    %36 = vector.shape_cast %28 : vector<16x128xf32> to vector<2x8x128xf32>
    %cst_11 = arith.constant dense<0.000000e+00> : vector<8x128xf32>
    %37 = vector.multi_reduction <add>, %36, %cst_11 [0] : vector<2x8x128xf32> to vector<8x128xf32>
    %38 = arith.addf %3, %37 : vector<8x128xf32>
    %39 = vector.shape_cast %9 : vector<16x128xf32> to vector<2x8x128xf32>
    %cst_12 = arith.constant dense<0.000000e+00> : vector<8x128xf32>
    %40 = vector.multi_reduction <add>, %39, %cst_12 [0] : vector<2x8x128xf32> to vector<8x128xf32>
    %41 = arith.addf %3, %40 : vector<8x128xf32>
    %c1_i32 = arith.constant 1 : i32
    %c0_13 = arith.constant 0 : index
    %c0_14 = arith.constant 0 : index
    %c0_15 = arith.constant 0 : index
    %42 = vector.load %arg3[%c0_13, %c0_14, %c0_15] : memref<4x8x128xf32, #tpu.memory_space<vmem>>, vector<1x8x128xf32>
    %43 = vector.shape_cast %42 : vector<1x8x128xf32> to vector<8x128xf32>
    %44 = arith.addf %43, %31 : vector<8x128xf32>
    %c0_16 = arith.constant 0 : index
    %c0_17 = arith.constant 0 : index
    %c0_18 = arith.constant 0 : index
    %45 = vector.load %arg3[%c0_16, %c0_17, %c0_18] : memref<4x8x128xf32, #tpu.memory_space<vmem>>, vector<1x8x128xf32>
    %46 = vector.shape_cast %45 : vector<1x8x128xf32> to vector<8x128xf32>
    %47 = vector.shape_cast %44 : vector<8x128xf32> to vector<1x8x128xf32>
    tpu.vector_store %arg3[%c0_16, %c0_17, %c0_18], %47 {strides = array<i32>} : memref<4x8x128xf32, #tpu.memory_space<vmem>>, vector<1x8x128xf32>,
    %c1 = arith.constant 1 : index
    %c0_19 = arith.constant 0 : index
    %c0_20 = arith.constant 0 : index
    %48 = vector.load %arg3[%c1, %c0_19, %c0_20] : memref<4x8x128xf32, #tpu.memory_space<vmem>>, vector<1x8x128xf32>
    %49 = vector.shape_cast %48 : vector<1x8x128xf32> to vector<8x128xf32>
    %50 = arith.addf %49, %35 : vector<8x128xf32>
    %c1_21 = arith.constant 1 : index
    %c0_22 = arith.constant 0 : index
    %c0_23 = arith.constant 0 : index
    %51 = vector.load %arg3[%c1_21, %c0_22, %c0_23] : memref<4x8x128xf32, #tpu.memory_space<vmem>>, vector<1x8x128xf32>
    %52 = vector.shape_cast %51 : vector<1x8x128xf32> to vector<8x128xf32>
    %53 = vector.shape_cast %50 : vector<8x128xf32> to vector<1x8x128xf32>
    tpu.vector_store %arg3[%c1_21, %c0_22, %c0_23], %53 {strides = array<i32>} : memref<4x8x128xf32, #tpu.memory_space<vmem>>, vector<1x8x128xf32>,
    %c2 = arith.constant 2 : index
    %c0_24 = arith.constant 0 : index
    %c0_25 = arith.constant 0 : index
    %54 = vector.load %arg3[%c2, %c0_24, %c0_25] : memref<4x8x128xf32, #tpu.memory_space<vmem>>, vector<1x8x128xf32>
    %55 = vector.shape_cast %54 : vector<1x8x128xf32> to vector<8x128xf32>
    %56 = arith.addf %55, %38 : vector<8x128xf32>
    %c2_26 = arith.constant 2 : index
    %c0_27 = arith.constant 0 : index
    %c0_28 = arith.constant 0 : index
    %57 = vector.load %arg3[%c2_26, %c0_27, %c0_28] : memref<4x8x128xf32, #tpu.memory_space<vmem>>, vector<1x8x128xf32>
    %58 = vector.shape_cast %57 : vector<1x8x128xf32> to vector<8x128xf32>
    %59 = vector.shape_cast %56 : vector<8x128xf32> to vector<1x8x128xf32>
    tpu.vector_store %arg3[%c2_26, %c0_27, %c0_28], %59 {strides = array<i32>} : memref<4x8x128xf32, #tpu.memory_space<vmem>>, vector<1x8x128xf32>,
    %c3 = arith.constant 3 : index
    %c0_29 = arith.constant 0 : index
    %c0_30 = arith.constant 0 : index
    %60 = vector.load %arg3[%c3, %c0_29, %c0_30] : memref<4x8x128xf32, #tpu.memory_space<vmem>>, vector<1x8x128xf32>
    %61 = vector.shape_cast %60 : vector<1x8x128xf32> to vector<8x128xf32>
    %62 = arith.addf %61, %41 : vector<8x128xf32>
    %c3_31 = arith.constant 3 : index
    %c0_32 = arith.constant 0 : index
    %c0_33 = arith.constant 0 : index
    %63 = vector.load %arg3[%c3_31, %c0_32, %c0_33] : memref<4x8x128xf32, #tpu.memory_space<vmem>>, vector<1x8x128xf32>
    %64 = vector.shape_cast %63 : vector<1x8x128xf32> to vector<8x128xf32>
    %65 = vector.shape_cast %62 : vector<8x128xf32> to vector<1x8x128xf32>
    tpu.vector_store %arg3[%c3_31, %c0_32, %c0_33], %65 {strides = array<i32>} : memref<4x8x128xf32, #tpu.memory_space<vmem>>, vector<1x8x128xf32>,
    return
  }
  func.func @transform_0(%arg0: i32) -> (i32, i32) {
    %c0_i32 = arith.constant 0 : i32
    %c0_i32_0 = arith.constant 0 : i32
    return %arg0, %c0_i32 : i32, i32
  }
  func.func @transform_1(%arg0: i32) -> (i32, i32) {
    %c0_i32 = arith.constant 0 : i32
    %c0_i32_0 = arith.constant 0 : i32
    return %arg0, %c0_i32 : i32, i32
  }
  func.func @transform_2(%arg0: i32) -> (i32, i32, i32) {
    %c0_i32 = arith.constant 0 : i32
    %c0_i32_0 = arith.constant 0 : i32
    %c0_i32_1 = arith.constant 0 : i32
    %c0_i32_2 = arith.constant 0 : i32
    return %c0_i32, %c0_i32_0, %c0_i32_1 : i32, i32, i32
  }
}

</mosaic_0001>

<bundles_post_ra>
// kernel: combined_loss.1
= control target key start
LH: loop header
LB: loop body
LE: loop exit
PB: predicated region body
PF: predicated region fallthrough
CT: control target
= control target key end

     0   :  { %s156_s0 = inlined_call_operand.vmem [shape: f32[16,128], index: 0, kind: input, shape index: {}]   ;;  %s157_s1 = inlined_call_operand.vmem [shape: f32[16,128], index: 1, kind: input, shape index: {}]   ;;  %s158_s2 = inlined_call_operand.vmem [shape: f32[4,8,128], index: 2, kind: output, shape index: {}]  }
   0x1   :  { %v19_v0 = vld [vmem:[%s156_s0] sm:$0xff]  ;;  %v20_v1 = vld [vmem:[%s156_s0 + $0x8] sm:$0xff] }
   0x2   :  { %v23_v2 = vand.u32 2147483647, %v19_v0  ;;  %v24_v3 = vand.u32 2147483647, %v20_v1  ;;  %v21_v4 = vld [vmem:[%s157_s1] sm:$0xff]  ;;  %v22_v5 = vld [vmem:[%s157_s1 + $0x8] sm:$0xff] }
   0x3   :  { %v77_v8 = vadd.f32 %v22_v5, %v21_v4  ;;  %v31_v18 = vmax.f32 %v19_v0, 0.0  ;;  %v33_v19 = vmul.f32 %v21_v4, %v19_v0  ;;  %v32_v22 = vmax.f32 %v20_v1, 0.0 }
   0x4   :  { %v25_v6 = vsub.f32 0.0, %v23_v2  ;;  %v26_v7 = vsub.f32 0.0, %v24_v3  ;;  %v34_v23 = vmul.f32 %v22_v5, %v20_v1  ;;  %vm63_vm2 = vcmp.ge.f32.partialorder %v19_v0, 0.0 }
   0x5   :  { %103 = vst [vmem:[%s158_s2 + $0x18] sm:$0xff] %v77_v8  ;;  %v35_v27 = vsub.f32 %v31_v18, %v33_v19  ;;  %vm64_vm3 = vcmp.ge.f32.partialorder %v20_v1, 0.0 }
   0x6   :  { %v27_v9 = vmul.f32 1.442695, %v25_v6  ;;  %v29_v10 = vmul.f32 1.442695, %v26_v7  ;;  %v36_v30 = vsub.f32 %v32_v22, %v34_v23 }
   0x8   :  { %105 = vpow2.f32 %v27_v9 }
   0x9   :  { %107 = vpow2.f32 %v29_v10 }
  0x12   :  { %v106_v11 = vpop.eup %105 }
  0x13   :  { %v108_v12 = vpop.eup %107  ;;  %v37_v13 = vadd.f32 1.0, %v106_v11  ;;  %v40_v15 = vmul.f32 -0.5, %v106_v11  ;;  %v43_v20 = vand.u32 2147483647, %v106_v11 }
  0x14   :  { %v46_v14 = vadd.f32 1.0, %v108_v12  ;;  %v49_v16 = vmul.f32 -0.5, %v108_v12  ;;  %v52_v24 = vand.u32 2147483647, %v108_v12 }
  0x15   :  { %109 = vlog2.f32 %v37_v13  ;;  %v41_v17 = vadd.f32 1.0, %v40_v15  ;;  %vm44_vm0 = vcmp.lt.f32.partialorder %v43_v20, 0.0004427343 }
  0x16   :  { %111 = vlog2.f32 %v46_v14  ;;  %v50_v21 = vadd.f32 1.0, %v49_v16  ;;  %vm53_vm1 = vcmp.lt.f32.partialorder %v52_v24, 0.0004427343 }
  0x17   :  { %113 = vrcp.f32 %v37_v13  ;;  %v42_v25 = vmul.f32 %v106_v11, %v41_v17 }
  0x18   :  { %115 = vrcp.f32 %v46_v14  ;;  %v51_v28 = vmul.f32 %v108_v12, %v50_v21 }
  0x1f   :  { %v110_v26 = vpop.eup %109 }
  0x20   :  { %v112_v29 = vpop.eup %111  ;;  %v39_v31 = vmul.f32 0.6931472, %v110_v26 }
  0x21   :  { %v114_v32 = vpop.eup %113  ;;  %v48_v33 = vmul.f32 0.6931472, %v112_v29 }
  0x22   :  { %v116_v34 = vpop.eup %115  ;;  %v45_v35 = vsel %vm44_vm0, %v42_v25, %v39_v31  ;;  %v65_v36 = vsub.f32 1.0, %v114_v32 }
  0x23   :  { %v54_v37 = vsel %vm53_vm1, %v51_v28, %v48_v33  ;;  %v55_v38 = vadd.f32 %v45_v35, %v35_v27  ;;  %v66_v39 = vsub.f32 1.0, %v116_v34 }
  0x24   :  { %v56_v40 = vadd.f32 %v54_v37, %v36_v30  ;;  %v67_v41 = vsel %vm63_vm2, %v114_v32, %v65_v36 }
  0x25   :  { %v68_v42 = vsel %vm64_vm3, %v116_v34, %v66_v39  ;;  %v71_v43 = vmul.f32 %v67_v41, %v21_v4 }
  0x26   :  { %v69_v44 = vadd.f32 %v56_v40, %v55_v38  ;;  %v72_v45 = vmul.f32 %v68_v42, %v22_v5  ;;  %v75_v46 = vadd.f32 %v68_v42, %v67_v41 }
  0x28   :  { %v73_v47 = vadd.f32 %v72_v45, %v71_v43  ;;  %81 = vst [vmem:[%s158_s2] sm:$0xff] %v69_v44  ;;  %101 = vst [vmem:[%s158_s2 + $0x10] sm:$0xff] %v75_v46 }
  0x2a   :  { %99 = vst [vmem:[%s158_s2 + $0x8] sm:$0xff] %v73_v47 }

</bundles_post_ra>
